<compile_context>
chip_gen: v5e
topology: v5e:2x2
jax: 0.10.0
libtpu: 0.0.40
codegen_flags: <defaults>
</compile_context>

<pallas_src>
import jax
import jax.numpy as jnp
import numpy as np
from jax import lax
from jax.experimental import pallas as pl
from jax.experimental.pallas import tpu as pltpu


def _round_up(x, m):
    return (x + m - 1) // m * m


def _yolo_head_kernel(x_ref, w1_ref, bn_bias_ref, w2_ref, b2_ref, o_ref):
    """One M-tile of the YOLO head.

    x_ref:       (M_TILE, K_pad)       bf16 im2col patches (K = 9*C_in, sublane-padded)
    w1_ref:      (K_pad, C_mid)        bf16 3x3 conv weights, BN scale pre-folded
    bn_bias_ref: (1, C_mid)            f32 folded BN bias
    w2_ref:      (C_mid, C_pred_pad)   bf16 1x1 conv weights (lane-padded to 128)
    b2_ref:      (1, C_pred_pad)       f32 1x1 conv bias
    o_ref:       (M_TILE, C_pred_pad)  bf16 lane-dense output
    """
    # 3x3 conv (padding=1) as a single im2col matmul on the MXU, f32 accumulate.
    acc = jnp.dot(x_ref[...], w1_ref[...], preferred_element_type=jnp.float32)
    # Folded BatchNorm bias (scale already folded into w1) + LeakyReLU(0.1).
    h = acc + bn_bias_ref[...]
    h = jnp.maximum(h, 0.1 * h)
    # 1x1 prediction conv == channel matmul, plus bias.
    out = jnp.dot(h.astype(jnp.bfloat16), w2_ref[...],
                  preferred_element_type=jnp.float32) + b2_ref[...]
    o_ref[...] = out.astype(o_ref.dtype)


def yolo_head_pallas(x_nchw, params, num_anchors, num_classes, *, m_tile=512):
    N, C_in, H, W = x_nchw.shape
    C_pred = num_anchors * (5 + num_classes)
    C_mid = params["conv1_w"].shape[0]
    HW = H * W
    K = 9 * C_in

    LANE = 128
    SUBLANE_BF16 = 16
    K_pad = _round_up(K, SUBLANE_BF16)     # sublane-pad only; no 128-wide HBM padding
    C_pred_pad = _round_up(C_pred, LANE)   # lane-dense output store only

    # Flatten batch into the spatial axis (single M grid axis); cap m_tile so
    # there are at least two grid steps (v7x has two TensorCores).
    total_m = N * HW
    m_tile = min(m_tile, max(8, _round_up(pl.cdiv(total_m, 2), 8)))
    M_pad = _round_up(total_m, m_tile)
    num_steps = M_pad // m_tile

    # ---- wrapper-side im2col, built in bf16 end-to-end.  C_in is tiny here so
    # the 9x slab is cheap; at production C_in >= 128 the taps should be formed
    # in-kernel from an NHWC halo block instead of materializing this slab. ----
    xb = x_nchw.astype(jnp.bfloat16)
    x_halo = jnp.pad(xb, ((0, 0), (0, 0), (1, 1), (1, 1)))            # (N,Cin,H+2,W+2)
    taps = [x_halo[:, :, dy:dy + H, dx:dx + W]
            for dy in range(3) for dx in range(3)]                    # 9 x (N,Cin,H,W)
    slab = jnp.stack(taps, axis=0)                                    # (9,N,Cin,H,W)
    slab = jnp.transpose(slab, (1, 3, 4, 0, 2)).reshape(total_m, K)   # (N*HW, 9*Cin)
    slab = jnp.pad(slab, ((0, M_pad - total_m), (0, K_pad - K)))      # stays bf16

    # ---- fold BatchNorm (eval) scale into the 3x3 conv weights, in f32,
    # BEFORE the bf16 cast. ----
    eps = 1e-5
    bn_scale = (params["bn_gamma"] /
                jnp.sqrt(params["bn_var"] + eps)).astype(jnp.float32)          # (C_mid,)
    bn_bias = (params["bn_beta"] - params["bn_mean"] * bn_scale
               ).astype(jnp.float32).reshape(1, C_mid)

    # PyTorch Conv2d weight (Cmid, Cin, 3, 3) -> (3,3,Cin,Cmid) -> (9*Cin, Cmid).
    w1 = jnp.transpose(params["conv1_w"].astype(jnp.float32),
                       (2, 3, 1, 0)).reshape(K, C_mid)
    w1 = w1 * bn_scale[None, :]                                       # fold BN scale
    w1 = jnp.pad(w1, ((0, K_pad - K), (0, 0))).astype(jnp.bfloat16)

    # 1x1 conv weight (Cpred, Cmid, 1, 1) -> (Cmid, Cpred), lane-padded to 128.
    w2 = jnp.transpose(params["conv2_w"][:, :, 0, 0], (1, 0)).astype(jnp.float32)
    w2 = jnp.pad(w2, ((0, 0), (0, C_pred_pad - C_pred))).astype(jnp.bfloat16)
    b2 = jnp.pad(params["conv2_b"].astype(jnp.float32),
                 (0, C_pred_pad - C_pred)).reshape(1, C_pred_pad)

    cost = pl.CostEstimate(
        flops=2 * total_m * (K * C_mid + C_mid * C_pred),
        transcendentals=0,
        bytes_accessed=int(slab.size * 2 + w1.size * 2 + w2.size * 2
                           + bn_bias.size * 4 + b2.size * 4
                           + M_pad * C_pred_pad * 2),
    )

    out_pad = pl.pallas_call(
        _yolo_head_kernel,
        out_shape=jax.ShapeDtypeStruct((M_pad, C_pred_pad), jnp.bfloat16),
        grid_spec=pltpu.PrefetchScalarGridSpec(
            num_scalar_prefetch=0,
            grid=(num_steps,),
            in_specs=[
                pl.BlockSpec((m_tile, K_pad), lambda m: (m, 0)),
                # Constant-index weight/bias blocks: fetched once, resident
                # across the grid.  (At production C_mid on v7x these should be
                # single-buffered or K-streamed to fit 64 MiB VMEM.)
                pl.BlockSpec((K_pad, C_mid), lambda m: (0, 0)),
                pl.BlockSpec((1, C_mid), lambda m: (0, 0)),
                pl.BlockSpec((C_mid, C_pred_pad), lambda m: (0, 0)),
                pl.BlockSpec((1, C_pred_pad), lambda m: (0, 0)),
            ],
            out_specs=pl.BlockSpec((m_tile, C_pred_pad), lambda m: (m, 0)),
        ),
        compiler_params=pltpu.CompilerParams(
            dimension_semantics=("parallel",)),
        cost_estimate=cost,
    )(slab, w1, bn_bias, w2, b2)

    # Slice away row / lane padding, cast back to f32, and reshape to the
    # PyTorch output layout (N, H, W, num_anchors, 5 + num_classes)
    # (== permute(0,2,3,1).reshape).
    out = out_pad[:total_m, :C_pred].astype(jnp.float32)
    return out.reshape(N, H, W, num_anchors, 5 + num_classes)


def yolo_head_ref(x_nchw, params, num_anchors, num_classes):
    """Pure-JAX reference matching the PyTorch forward (BN in eval mode)."""
    y = lax.conv_general_dilated(
        x_nchw, params["conv1_w"], window_strides=(1, 1),
        padding=((1, 1), (1, 1)), dimension_numbers=("NCHW", "OIHW", "NCHW"))
    eps = 1e-5
    scale = params["bn_gamma"] / jnp.sqrt(params["bn_var"] + eps)
    bias = params["bn_beta"] - params["bn_mean"] * scale
    y = y * scale[None, :, None, None] + bias[None, :, None, None]
    y = jnp.where(y > 0, y, 0.1 * y)
    y = lax.conv_general_dilated(
        y, params["conv2_w"], window_strides=(1, 1), padding="VALID",
        dimension_numbers=("NCHW", "OIHW", "NCHW"))
    y = y + params["conv2_b"][None, :, None, None]
    y = jnp.transpose(y, (0, 2, 3, 1))
    N, H, W, _ = y.shape
    return y.reshape(N, H, W, num_anchors, 5 + num_classes)


def make_params(key, in_channels, intermediate_channels, num_anchors, num_classes):
    c_pred = num_anchors * (5 + num_classes)
    ks = jax.random.split(key, 6)
    return {
        # ConvBlock conv (bias=False because BN follows)
        "conv1_w": 0.1 * jax.random.normal(
            ks[0], (intermediate_channels, in_channels, 3, 3), jnp.float32),
        "bn_gamma": 1.0 + 0.1 * jax.random.normal(
            ks[1], (intermediate_channels,), jnp.float32),
        "bn_beta": 0.1 * jax.random.normal(
            ks[2], (intermediate_channels,), jnp.float32),
        "bn_mean": 0.05 * jax.random.normal(
            ks[3], (intermediate_channels,), jnp.float32),
        "bn_var": jnp.abs(1.0 + 0.1 * jax.random.normal(
            ks[4], (intermediate_channels,), jnp.float32)),
        # final 1x1 prediction conv (with bias)
        "conv2_w": 0.1 * jax.random.normal(
            ks[5], (c_pred, intermediate_channels, 1, 1), jnp.float32),
        "conv2_b": 0.01 * jnp.arange(c_pred, dtype=jnp.float32),
    }


if __name__ == "__main__":
    # YOLOHead(in_channels=4, num_anchors=3, num_classes=2,
    # intermediate_channels=32) on a (2, 4, 16, 16) feature map.
    N, C_in, H, W = 2, 4, 16, 16
    num_anchors, num_classes, C_mid = 3, 2, 32

    key = jax.random.PRNGKey(0)
    k_x, k_p = jax.random.split(key)
    x = jax.random.normal(k_x, (N, C_in, H, W), jnp.float32)
    params = make_params(k_p, C_in, C_mid, num_anchors, num_classes)

    out = yolo_head_pallas(x, params, num_anchors, num_classes)
    out = jax.block_until_ready(out)

    ref = yolo_head_ref(x, params, num_anchors, num_classes)
    assert out.shape == (N, H, W, num_anchors, 5 + num_classes), out.shape
    # Precision contract: bf16 operands / bf16 output store with f32 MXU
    # accumulation -> compare at 5e-2 against the f32 reference.
    np.testing.assert_allclose(np.asarray(out), np.asarray(ref),
                               rtol=5e-2, atol=5e-2)
    print("KERNEL_OK")
</pallas_src>

<mosaic_0001>
module attributes {stable_mosaic.version = 11 : i64} {
  func.func @_yolo_head_kernel(%arg0: i32, %arg1: memref<256x48xbf16, #tpu.memory_space<vmem>>, %arg2: memref<48x32xbf16, #tpu.memory_space<vmem>>, %arg3: memref<1x32xf32, #tpu.memory_space<vmem>>, %arg4: memref<32x128xbf16, #tpu.memory_space<vmem>>, %arg5: memref<1x128xf32, #tpu.memory_space<vmem>>, %arg6: memref<256x128xbf16, #tpu.memory_space<vmem>>) attributes {dimension_semantics = [#tpu.dimension_semantics<parallel>], iteration_bounds = array<i64: 2>, scalar_prefetch = 0 : i64, scratch_operands = 0 : i64, tpu.core_type = #tpu.core_type<tc>, window_params = [{transform_indices = @transform_0, window_bounds = array<i64: 256, 48>}, {pipeline_mode = #tpu.pipeline_mode<synchronous>, transform_indices = @transform_1, window_bounds = array<i64: 48, 32>}, {pipeline_mode = #tpu.pipeline_mode<synchronous>, transform_indices = @transform_2, window_bounds = array<i64: 1, 32>}, {pipeline_mode = #tpu.pipeline_mode<synchronous>, transform_indices = @transform_3, window_bounds = array<i64: 32, 128>}, {pipeline_mode = #tpu.pipeline_mode<synchronous>, transform_indices = @transform_4, window_bounds = array<i64: 1, 128>}, {transform_indices = @transform_5, window_bounds = array<i64: 256, 128>}]} {
    %c0 = arith.constant 0 : index
    %c0_0 = arith.constant 0 : index
    %0 = vector.load %arg1[%c0, %c0_0] : memref<256x48xbf16, #tpu.memory_space<vmem>>, vector<256x48xbf16>
    %c0_1 = arith.constant 0 : index
    %c0_2 = arith.constant 0 : index
    %1 = vector.load %arg2[%c0_1, %c0_2] : memref<48x32xbf16, #tpu.memory_space<vmem>>, vector<48x32xbf16>
    %cst = arith.constant dense<0.000000e+00> : vector<256x32xf32>
    %2 = tpu.matmul %0, %1, %cst {dimension_numbers = #tpu.dot_dimension_numbers<[1], [0], [0], [1], [0, 0, 1, 1], [], []>} : vector<256x48xbf16>, vector<48x32xbf16>, vector<256x32xf32> -> vector<256x32xf32>
    %c0_3 = arith.constant 0 : index
    %c0_4 = arith.constant 0 : index
    %3 = vector.load %arg3[%c0_3, %c0_4] : memref<1x32xf32, #tpu.memory_space<vmem>>, vector<1x32xf32>
    %4 = vector.broadcast %3 : vector<1x32xf32> to vector<256x32xf32>
    %5 = arith.addf %2, %4 : vector<256x32xf32>
    %cst_5 = arith.constant 1.000000e-01 : f32
    %6 = vector.broadcast %cst_5 : f32 to vector<256x32xf32>
    %7 = arith.mulf %6, %5 : vector<256x32xf32>
    %8 = arith.maximumf %5, %7 : vector<256x32xf32>
    %9 = arith.truncf %8 : vector<256x32xf32> to vector<256x32xbf16>
    %c0_6 = arith.constant 0 : index
    %c0_7 = arith.constant 0 : index
    %10 = vector.load %arg4[%c0_6, %c0_7] : memref<32x128xbf16, #tpu.memory_space<vmem>>, vector<32x128xbf16>
    %cst_8 = arith.constant dense<0.000000e+00> : vector<256x128xf32>
    %11 = tpu.matmul %9, %10, %cst_8 {dimension_numbers = #tpu.dot_dimension_numbers<[1], [0], [0], [1], [0, 0, 1, 1], [], []>} : vector<256x32xbf16>, vector<32x128xbf16>, vector<256x128xf32> -> vector<256x128xf32>
    %c0_9 = arith.constant 0 : index
    %c0_10 = arith.constant 0 : index
    %12 = vector.load %arg5[%c0_9, %c0_10] : memref<1x128xf32, #tpu.memory_space<vmem>>, vector<1x128xf32>
    %13 = vector.broadcast %12 : vector<1x128xf32> to vector<256x128xf32>
    %14 = arith.addf %11, %13 : vector<256x128xf32>
    %15 = arith.truncf %14 : vector<256x128xf32> to vector<256x128xbf16>
    %c0_11 = arith.constant 0 : index
    %c0_12 = arith.constant 0 : index
    %16 = vector.load %arg6[%c0_11, %c0_12] : memref<256x128xbf16, #tpu.memory_space<vmem>>, vector<256x128xbf16>
    tpu.vector_store %arg6[%c0_11, %c0_12], %15 {strides = array<i32>} : memref<256x128xbf16, #tpu.memory_space<vmem>>, vector<256x128xbf16>,
    return
  }
  func.func @transform_0(%arg0: i32) -> (i32, i32) {
    %c0_i32 = arith.constant 0 : i32
    %c0_i32_0 = arith.constant 0 : i32
    return %arg0, %c0_i32 : i32, i32
  }
  func.func @transform_1(%arg0: i32) -> (i32, i32) {
    %c0_i32 = arith.constant 0 : i32
    %c0_i32_0 = arith.constant 0 : i32
    %c0_i32_1 = arith.constant 0 : i32
    return %c0_i32, %c0_i32_0 : i32, i32
  }
  func.func @transform_2(%arg0: i32) -> (i32, i32) {
    %c0_i32 = arith.constant 0 : i32
    %c0_i32_0 = arith.constant 0 : i32
    %c0_i32_1 = arith.constant 0 : i32
    return %c0_i32, %c0_i32_0 : i32, i32
  }
  func.func @transform_3(%arg0: i32) -> (i32, i32) {
    %c0_i32 = arith.constant 0 : i32
    %c0_i32_0 = arith.constant 0 : i32
    %c0_i32_1 = arith.constant 0 : i32
    return %c0_i32, %c0_i32_0 : i32, i32
  }
  func.func @transform_4(%arg0: i32) -> (i32, i32) {
    %c0_i32 = arith.constant 0 : i32
    %c0_i32_0 = arith.constant 0 : i32
    %c0_i32_1 = arith.constant 0 : i32
    return %c0_i32, %c0_i32_0 : i32, i32
  }
  func.func @transform_5(%arg0: i32) -> (i32, i32) {
    %c0_i32 = arith.constant 0 : i32
    %c0_i32_0 = arith.constant 0 : i32
    return %arg0, %c0_i32 : i32, i32
  }
}

</mosaic_0001>

<bundles_post_ra>
// kernel: tpu_custom_call.1
= control target key start
LH: loop header
LB: loop body
LE: loop exit
PB: predicated region body
PF: predicated region fallthrough
CT: control target
= control target key end

     0   :  { %10 = vsyncpa [#allocation3], 0  ;;  %s1523_s0 = inlined_call_operand.vmem [shape: bf16[512,48], index: 0, kind: input, shape index: {}]   ;;  %s1524_s1 = inlined_call_operand.vmem [shape: bf16[48,32], index: 1, kind: input, shape index: {}]   ;;  %s1525_s2 = inlined_call_operand.vmem [shape: f32[1,32], index: 2, kind: input, shape index: {}]   ;;  %s1526_s3 = inlined_call_operand.vmem [shape: bf16[32,128], index: 3, kind: input, shape index: {}]   ;;  %s1527_s4 = inlined_call_operand.vmem [shape: f32[1,128], index: 4, kind: input, shape index: {}]   ;;  %s1528_s5 = inlined_call_operand.hbm [shape: bf16[512,128], index: 5, kind: output, shape index: {}]  }
   0x1   :  { %12 = vsyncpa [#allocation3 + $0x1], 0  ;;  %s1274_s18 = smov 0   ;;  %s1276_s19 = smov 0  }
   0x2   :  { %s1278_s20 = smov 0   ;;  %s1280_s21 = smov 0  }
   0x3 LB: > { %s1295_s22 = sadd.s32 4294967295, %s1240_s21   ;;  %s885_s23 = sadd.s32 4294967294, %s1240_s21   ;;  %s1240_s21 = sphi %s1280_s21, %s1534_s21   ;;  %s1236_s20 = sphi %s1278_s20, %s1533_s20   ;;  %s1232_s19 = sphi %s1276_s19, %s1532_s19   ;;  %s1228_s18 = sphi %s1274_s18, %s1531_s18  }
   0x4   : > { %s1299_s24 = sadd.s32 1, %s1240_s21   ;;  %s135_s25 = sadd.s32 1, %s1236_s20 }
   0x5   : > { %s132_s26 = ssub.s32 %s1240_s21, %s1299_s24  ;;  %p145_p0 = scmp.ne.s32.totalorder %s1236_s20, %s1232_s19 }
   0x6   : > { %p133_p1 = scmp.eq.s32.totalorder %s132_s26, 0  ;;  %p146_p2 = scmp.eq.s32.totalorder %s1295_s22, 1 }
   0x7   : > { %p151_p3 = scmp.ne.s32.totalorder %s1232_s19, %s1228_s18  ;;  %p152_p4 = scmp.eq.s32.totalorder %s885_s23, 1 }
   0x8   : > { %s1310_s27 = scalar_select %p133_p1, %s1236_s20, %s135_s25  }
   0x9   : > { %p1312_p5 = por %p146_p2, %p145_p0  ;;  %p1316_p6 = por %p152_p4, %p151_p3 }
   0xa   : > { %p888_p7 = scmp.ge.s32.totalorder %s1240_s21, 1  ;;  %p191_p8 = scmp.lt.s32.totalorder %s1240_s21, 3 }
   0xc   : > { %p192_p9 = pnand %p888_p7, %p191_p8 }
   0xd   : > { %s890_s7 = sshll.u32 (!%p192_p9), %s1295_s22, 5  ;;  %s216_s6 = sand.u32 (!%p192_p9), 1, %s1232_s19  }
   0xe   : > { %195 = sbr.rel (%p192_p9) target bundleno = 443 (0x1bb), region = 40  ;;  %p220_p10 = scmp.lt.s32.totalorder (!%p192_p9), %s890_s7, 63 }
   0xf   : > { %s889_s9 = sshll.u32 (!%p192_p9), %s216_s6, 7  ;;  %s1034_s11 = sshll.u32 (!%p192_p9), %s1295_s22, 7 }
  0x10   : > { %s819_s14 = scalar_lea.hbm (!%p192_p9), %s1528_s5, %s1034_s11  ;;  %s808_s22 = scalar_lea.sflag (!%p192_p9), [#allocation3], %s216_s6 }
  0x11   : > { %s822_s16 = sshll.u32 (!%p192_p9), %s819_s14, 4  ;;  %s1198_s30 = scalar_lea.hbm (!%p192_p9), %s1528_s5, 256  ;;  %s823_s16 = int_to_ptr.hbm [resolvable:$true] %s822_s16 }
  0x12   : > { %s1192_s17 = sshra.s32 (!%p192_p9), %s823_s16, 4  ;;  %s1193_s17 = int_to_ptr.hbm [resolvable:$true] %s1192_s17 }
  0x13   : > { %v1031_v0 = vld [vmem:[%s1524_s1 + $0x10] sm:$0xff]  ;;  %v1030_v1 = vld [vmem:[%s1524_s1 + $0x8] sm:$0xff]  ;;  %s1536_s7 = smov (!%p220_p10, %s890_s7), 63  ;;  %v1029_v2 = vld [vmem:[%s1524_s1] sm:$0xff]  ;;  %vm367_vm0 = vcmask 392192   ;;  %vm605_vm1 = vcmask 261120   ;;  %p1199_p0 = scmp.lt.s32.totalorder %s1193_s17, %s1528_s5 }
  0x14   : > { %421 = vmatpush.bf16.msra.mxu0 %v1031_v0  ;;  %1130 = vmatpush.bf16.msra.mxu2 %v1031_v0  ;;  %s891_s10 = sshll.u32 %s1536_s7, 2  ;;  %v1033_v17 = vld [vmem:[%s1526_s3 + $0x8] sm:$0xff]  ;;  %v1032_v18 = vld [vmem:[%s1526_s3] sm:$0xff]  ;;  %s1194_s23 = scalar_lea.hbm %s1193_s17, 128 }
  0x15   : > { %s1335_s15 = scalar_lea.vmem %s1523_s0, %s891_s10  ;;  %660 = vmatpush.bf16.msra.mxu1 %v1033_v17  ;;  %1133 = vmatpush.bf16.msra.mxu3 %v1033_v17  ;;  %v1378_v22 = vld [vmem:[%s1525_s2] ss:$0 sm:$0xff]  ;;  %s1441_s10 = scalar_lea.vmem [#allocation2], %s889_s9 }
  0x16   : > { %v1013_v3 = vld [vmem:[%s1335_s15] sm:$0xff]  ;;  %v1014_v5 = vld [vmem:[%s1335_s15 + $0x8] sm:$0xff]  ;;  %v1015_v7 = vld [vmem:[%s1335_s15 + $0x10] sm:$0xff]  ;;  %p1195_p11 = scmp.ne.s32.totalorder %s1193_s17, %s1194_s23  ;;  %p1200_p1 = scmp.lt.s32.totalorder %s1198_s30, %s1194_s23 }
  0x17   : > { %v1021_v4 = vld [vmem:[%s1335_s15 + $0x40] sm:$0xff]  ;;  %v1022_v6 = vld [vmem:[%s1335_s15 + $0x48] sm:$0xff]  ;;  %v1023_v8 = vld [vmem:[%s1335_s15 + $0x50] sm:$0xff] }
  0x18   : > { %422 = vmatpush.bf16.msra.mxu0 %v1030_v1  ;;  %1131 = vmatpush.bf16.msra.mxu2 %v1030_v1  ;;  %v1016_v9 = vld [vmem:[%s1335_s15 + $0x18] sm:$0xff]  ;;  %v1017_v11 = vld [vmem:[%s1335_s15 + $0x20] sm:$0xff]  ;;  %v1018_v13 = vld [vmem:[%s1335_s15 + $0x28] sm:$0xff]  ;;  %p1196_p12 = pnand %p1195_p11, %p1312_p5  ;;  %p1201_p2 = por %p1200_p1, %p1199_p0 }
  0x19   : > { %v1024_v10 = vld [vmem:[%s1335_s15 + $0x58] sm:$0xff]  ;;  %v1025_v12 = vld [vmem:[%s1335_s15 + $0x60] sm:$0xff]  ;;  %v1026_v14 = vld [vmem:[%s1335_s15 + $0x68] sm:$0xff]  ;;  %661 = vmatpush.bf16.msra.mxu1 %v1032_v18  ;;  %1134 = vmatpush.bf16.msra.mxu3 %v1032_v18 }
  0x1a   : > { %v1019_v15 = vld [vmem:[%s1335_s15 + $0x30] sm:$0xff]  ;;  %v1020_v19 = vld [vmem:[%s1335_s15 + $0x38] sm:$0xff]  ;;  %p1197_p13 = pneg %p1196_p12 }
  0x1b   : > { %v1027_v16 = vld [vmem:[%s1335_s15 + $0x70] sm:$0xff]  ;;  %v1028_v20 = vld [vmem:[%s1335_s15 + $0x78] sm:$0xff]  ;;  %s820_s15 = sshll.u32 %s1441_s10, 4  ;;  %s821_s15 = int_to_ptr.vmem [resolvable:$true] %s820_s15 }
  0x1c   : > { %423 = vmatpush.bf16.msra.mxu0 %v1029_v2  ;;  %1132 = vmatpush.bf16.msra.mxu2 %v1029_v2  ;;  %p1202_p3 = pnand %p1201_p2, %p1197_p13 }
  0x1f   : > { %968 = vmatmul.msk.bf16.vlgmr.msra.gmra.mxu0 %vm367_vm0, %v1013_v3  ;;  %976 = vmatmul.msk.bf16.vlgmr.msra.gmra.mxu2 %vm367_vm0, %v1021_v4 }
  0x2f   : > { %969 = vmatmul.msk.bf16.gmra.mxu0 %vm367_vm0, %v1014_v5  ;;  %977 = vmatmul.msk.bf16.gmra.mxu2 %vm367_vm0, %v1022_v6 }
  0x3f   : > { %970 = vmatmul.msk.bf16.gmra.mxu0 %vm367_vm0, %v1015_v7  ;;  %978 = vmatmul.msk.bf16.gmra.mxu2 %vm367_vm0, %v1023_v8 }
  0x4f   : > { %971 = vmatmul.msk.bf16.gmra.mxu0 %vm367_vm0, %v1016_v9  ;;  %979 = vmatmul.msk.bf16.gmra.mxu2 %vm367_vm0, %v1024_v10 }
  0x5f   : > { %972 = vmatmul.msk.bf16.gmra.mxu0 %vm367_vm0, %v1017_v11  ;;  %980 = vmatmul.msk.bf16.gmra.mxu2 %vm367_vm0, %v1025_v12 }
  0x6f   : > { %973 = vmatmul.msk.bf16.gmra.mxu0 %vm367_vm0, %v1018_v13  ;;  %981 = vmatmul.msk.bf16.gmra.mxu2 %vm367_vm0, %v1026_v14 }
  0x7f   : > { %974 = vmatmul.msk.bf16.gmra.mxu0 %vm367_vm0, %v1019_v15  ;;  %982 = vmatmul.msk.bf16.gmra.mxu2 %vm367_vm0, %v1027_v16 }
  0x8f   : > { %975 = vmatmul.msk.bf16.gmra.mxu0 %vm367_vm0, %v1020_v19  ;;  %983 = vmatmul.msk.bf16.gmra.mxu2 %vm367_vm0, %v1028_v20 }
  0x9c   : > { %v425_v21 = vpop.f32.mrf.mxu0 }
  0x9d   : > { %v426_v23 = vadd.f32 %v1378_v22, %v425_v21 }
  0x9f   : > { %v505_v26 = vmul.f32 0.1, %v426_v23 }
  0xa1   : > { %v537_v30 = vmax.f32 %v426_v23, %v505_v26 }
  0xa2   : > { %v465_v24 = vpop.f32.mrf.mxu2 }
  0xa3   : > { %v466_v28 = vadd.f32 %v1378_v22, %v465_v24 }
  0xa4   : > { %v427_v25 = vpop.f32.mrf.mxu0 }
  0xa5   : > { %v428_v27 = vadd.f32 %v1378_v22, %v427_v25  ;;  %v521_v33 = vmul.f32 0.1, %v466_v28 }
  0xa7   : > { %v506_v29 = vmul.f32 0.1, %v428_v27  ;;  %v553_v38 = vmax.f32 %v466_v28, %v521_v33 }
  0xa9   : > { %v538_v31 = vmax.f32 %v428_v27, %v506_v29 }
  0xaa   : > { %v467_v32 = vpop.f32.mrf.mxu2 }
  0xab   : > { %v468_v34 = vadd.f32 %v1378_v22, %v467_v32  ;;  %v569_v35 = vpack.c.bf16 %v538_v31, %v537_v30 }
  0xac   : > { %v430_v36 = vpop.f32.mrf.mxu0 }
  0xad   : > { %v522_v37 = vmul.f32 0.1, %v468_v34  ;;  %992 = vmatmul.msk.bf16.vlgmr.msra.gmra.mxu1 %vm605_vm1, %v569_v35  ;;  %v431_v40 = vadd.f32 %v1378_v22, %v430_v36 }
  0xaf   : > { %v554_v39 = vmax.f32 %v468_v34, %v522_v37  ;;  %v507_v44 = vmul.f32 0.1, %v431_v40 }
  0xb1   : > { %v1386_v41 = vpack.c.bf16 %v554_v39, %v553_v38  ;;  %v539_v48 = vmax.f32 %v431_v40, %v507_v44 }
  0xb2   : > { %v470_v42 = vpop.f32.mrf.mxu2 }
  0xb3   : > { %v471_v46 = vadd.f32 %v1378_v22, %v470_v42 }
  0xb4   : > { %v432_v43 = vpop.f32.mrf.mxu0 }
  0xb5   : > { %v433_v45 = vadd.f32 %v1378_v22, %v432_v43  ;;  %v523_v51 = vmul.f32 0.1, %v471_v46 }
  0xb7   : > { %v508_v47 = vmul.f32 0.1, %v433_v45  ;;  %v555_v56 = vmax.f32 %v471_v46, %v523_v51 }
  0xb9   : > { %v540_v49 = vmax.f32 %v433_v45, %v508_v47 }
  0xba   : > { %v472_v50 = vpop.f32.mrf.mxu2 }
  0xbb   : > { %v473_v52 = vadd.f32 %v1378_v22, %v472_v50  ;;  %v570_v53 = vpack.c.bf16 %v540_v49, %v539_v48 }
  0xbc   : > { %v435_v54 = vpop.f32.mrf.mxu0 }
  0xbd   : > { %v524_v55 = vmul.f32 0.1, %v473_v52  ;;  %993 = vmatmul.msk.bf16.gmra.mxu1 %vm605_vm1, %v570_v53  ;;  %v436_v58 = vadd.f32 %v1378_v22, %v435_v54 }
  0xbf   : > { %v556_v57 = vmax.f32 %v473_v52, %v524_v55  ;;  %v509_v62 = vmul.f32 0.1, %v436_v58 }
  0xc1   : > { %v578_v59 = vpack.c.bf16 %v556_v57, %v555_v56  ;;  %v541_v2 = vmax.f32 %v436_v58, %v509_v62 }
  0xc2   : > { %v475_v60 = vpop.f32.mrf.mxu2 }
  0xc3   : > { %1001 = vmatmul.msk.bf16.vlgmr.msra.gmra.mxu3 %vm605_vm1, %v578_v59  ;;  %v476_v0 = vadd.f32 %v1378_v22, %v475_v60 }
  0xc4   : > { %v437_v61 = vpop.f32.mrf.mxu0 }
  0xc5   : > { %v438_v63 = vadd.f32 %v1378_v22, %v437_v61  ;;  %v525_v5 = vmul.f32 0.1, %v476_v0 }
  0xc7   : > { %v510_v1 = vmul.f32 0.1, %v438_v63  ;;  %v557_v10 = vmax.f32 %v476_v0, %v525_v5 }
  0xc9   : > { %v542_v3 = vmax.f32 %v438_v63, %v510_v1 }
  0xca   : > { %v477_v4 = vpop.f32.mrf.mxu2 }
  0xcb   : > { %v478_v6 = vadd.f32 %v1378_v22, %v477_v4  ;;  %v571_v7 = vpack.c.bf16 %v542_v3, %v541_v2 }
  0xcc   : > { %v440_v8 = vpop.f32.mrf.mxu0 }
  0xcd   : > { %v526_v9 = vmul.f32 0.1, %v478_v6  ;;  %994 = vmatmul.msk.bf16.gmra.mxu1 %vm605_vm1, %v571_v7  ;;  %v441_v12 = vadd.f32 %v1378_v22, %v440_v8 }
  0xcf   : > { %v558_v11 = vmax.f32 %v478_v6, %v526_v9  ;;  %v511_v16 = vmul.f32 0.1, %v441_v12 }
  0xd1   : > { %v579_v13 = vpack.c.bf16 %v558_v11, %v557_v10  ;;  %v543_v20 = vmax.f32 %v441_v12, %v511_v16 }
  0xd2   : > { %v480_v14 = vpop.f32.mrf.mxu2 }
  0xd3   : > { %1002 = vmatmul.msk.bf16.gmra.mxu3 %vm605_vm1, %v579_v13  ;;  %v481_v18 = vadd.f32 %v1378_v22, %v480_v14 }
  0xd4   : > { %v442_v15 = vpop.f32.mrf.mxu0 }
  0xd5   : > { %v443_v17 = vadd.f32 %v1378_v22, %v442_v15  ;;  %v527_v24 = vmul.f32 0.1, %v481_v18 }
  0xd7   : > { %v512_v19 = vmul.f32 0.1, %v443_v17  ;;  %v559_v29 = vmax.f32 %v481_v18, %v527_v24 }
  0xd9   : > { %v544_v21 = vmax.f32 %v443_v17, %v512_v19 }
  0xda   : > { %v482_v23 = vpop.f32.mrf.mxu2 }
  0xdb   : > { %v483_v25 = vadd.f32 %v1378_v22, %v482_v23  ;;  %v572_v26 = vpack.c.bf16 %v544_v21, %v543_v20 }
  0xdc   : > { %v445_v27 = vpop.f32.mrf.mxu0 }
  0xdd   : > { %v528_v28 = vmul.f32 0.1, %v483_v25  ;;  %995 = vmatmul.msk.bf16.gmra.mxu1 %vm605_vm1, %v572_v26  ;;  %v446_v31 = vadd.f32 %v1378_v22, %v445_v27 }
  0xdf   : > { %v560_v30 = vmax.f32 %v483_v25, %v528_v28  ;;  %v513_v35 = vmul.f32 0.1, %v446_v31 }
  0xe1   : > { %v580_v32 = vpack.c.bf16 %v560_v30, %v559_v29  ;;  %v545_v39 = vmax.f32 %v446_v31, %v513_v35 }
  0xe2   : > { %v485_v33 = vpop.f32.mrf.mxu2 }
  0xe3   : > { %1003 = vmatmul.msk.bf16.gmra.mxu3 %vm605_vm1, %v580_v32  ;;  %v486_v37 = vadd.f32 %v1378_v22, %v485_v33 }
  0xe4   : > { %v447_v34 = vpop.f32.mrf.mxu0 }
  0xe5   : > { %v448_v36 = vadd.f32 %v1378_v22, %v447_v34  ;;  %v529_v43 = vmul.f32 0.1, %v486_v37 }
  0xe7   : > { %v514_v38 = vmul.f32 0.1, %v448_v36  ;;  %v561_v48 = vmax.f32 %v486_v37, %v529_v43  ;;  %v1435_v43 = vld [vmem:[%s1527_s4] ss:$0 sm:$0xff] }
  0xe9   : > { %v546_v40 = vmax.f32 %v448_v36, %v514_v38 }
  0xea   : > { %v487_v42 = vpop.f32.mrf.mxu2 }
  0xeb   : > { %v488_v44 = vadd.f32 %v1378_v22, %v487_v42  ;;  %v573_v45 = vpack.c.bf16 %v546_v40, %v545_v39 }
  0xec   : > { %v450_v46 = vpop.f32.mrf.mxu0 }
  0xed   : > { %v530_v47 = vmul.f32 0.1, %v488_v44  ;;  %996 = vmatmul.msk.bf16.gmra.mxu1 %vm605_vm1, %v573_v45  ;;  %v451_v50 = vadd.f32 %v1378_v22, %v450_v46 }
  0xef   : > { %v562_v49 = vmax.f32 %v488_v44, %v530_v47  ;;  %v515_v54 = vmul.f32 0.1, %v451_v50 }
  0xf1   : > { %v581_v51 = vpack.c.bf16 %v562_v49, %v561_v48  ;;  %v547_v58 = vmax.f32 %v451_v50, %v515_v54 }
  0xf2   : > { %v490_v52 = vpop.f32.mrf.mxu2 }
  0xf3   : > { %1004 = vmatmul.msk.bf16.gmra.mxu3 %vm605_vm1, %v581_v51  ;;  %v491_v56 = vadd.f32 %v1378_v22, %v490_v52 }
  0xf4   : > { %v452_v53 = vpop.f32.mrf.mxu0 }
  0xf5   : > { %v453_v55 = vadd.f32 %v1378_v22, %v452_v53  ;;  %v531_v61 = vmul.f32 0.1, %v491_v56 }
  0xf7   : > { %v516_v57 = vmul.f32 0.1, %v453_v55  ;;  %v563_v2 = vmax.f32 %v491_v56, %v531_v61 }
  0xf9   : > { %v548_v59 = vmax.f32 %v453_v55, %v516_v57 }
  0xfa   : > { %v492_v60 = vpop.f32.mrf.mxu2 }
  0xfb   : > { %v493_v62 = vadd.f32 %v1378_v22, %v492_v60  ;;  %v574_v63 = vpack.c.bf16 %v548_v59, %v547_v58 }
  0xfc   : > { %v455_v0 = vpop.f32.mrf.mxu0 }
  0xfd   : > { %v532_v1 = vmul.f32 0.1, %v493_v62  ;;  %997 = vmatmul.msk.bf16.gmra.mxu1 %vm605_vm1, %v574_v63  ;;  %v456_v4 = vadd.f32 %v1378_v22, %v455_v0 }
  0xff   : > { %v564_v3 = vmax.f32 %v493_v62, %v532_v1  ;;  %v517_v8 = vmul.f32 0.1, %v456_v4 }
 0x101   : > { %v582_v5 = vpack.c.bf16 %v564_v3, %v563_v2  ;;  %v549_v12 = vmax.f32 %v456_v4, %v517_v8 }
 0x102   : > { %v495_v6 = vpop.f32.mrf.mxu2 }
 0x103   : > { %1005 = vmatmul.msk.bf16.gmra.mxu3 %vm605_vm1, %v582_v5  ;;  %v496_v10 = vadd.f32 %v1378_v22, %v495_v6 }
 0x104   : > { %v457_v7 = vpop.f32.mrf.mxu0 }
 0x105   : > { %v458_v9 = vadd.f32 %v1378_v22, %v457_v7  ;;  %v533_v15 = vmul.f32 0.1, %v496_v10 }
 0x107   : > { %v518_v11 = vmul.f32 0.1, %v458_v9  ;;  %v565_v20 = vmax.f32 %v496_v10, %v533_v15 }
 0x109   : > { %v550_v13 = vmax.f32 %v458_v9, %v518_v11 }
 0x10a   : > { %v497_v14 = vpop.f32.mrf.mxu2 }
 0x10b   : > { %v498_v16 = vadd.f32 %v1378_v22, %v497_v14  ;;  %v575_v17 = vpack.c.bf16 %v550_v13, %v549_v12 }
 0x10c   : > { %v460_v18 = vpop.f32.mrf.mxu0 }
 0x10d   : > { %v534_v19 = vmul.f32 0.1, %v498_v16  ;;  %998 = vmatmul.msk.bf16.gmra.mxu1 %vm605_vm1, %v575_v17  ;;  %v461_v23 = vadd.f32 %v1378_v22, %v460_v18 }
 0x10f   : > { %v566_v21 = vmax.f32 %v498_v16, %v534_v19  ;;  %v519_v27 = vmul.f32 0.1, %v461_v23 }
 0x111   : > { %v583_v24 = vpack.c.bf16 %v566_v21, %v565_v20  ;;  %v551_v31 = vmax.f32 %v461_v23, %v519_v27 }
 0x112   : > { %v500_v25 = vpop.f32.mrf.mxu2 }
 0x113   : > { %1006 = vmatmul.msk.bf16.gmra.mxu3 %vm605_vm1, %v583_v24  ;;  %v501_v29 = vadd.f32 %v1378_v22, %v500_v25 }
 0x114   : > { %v462_v26 = vpop.f32.mrf.mxu0 }
 0x115   : > { %v463_v28 = vadd.f32 %v1378_v22, %v462_v26  ;;  %v535_v34 = vmul.f32 0.1, %v501_v29 }
 0x117   : > { %v520_v30 = vmul.f32 0.1, %v463_v28  ;;  %v567_v38 = vmax.f32 %v501_v29, %v535_v34 }
 0x119   : > { %v552_v32 = vmax.f32 %v463_v28, %v520_v30 }
 0x11a   : > { %v502_v33 = vpop.f32.mrf.mxu2 }
 0x11b   : > { %v503_v35 = vadd.f32 %v1378_v22, %v502_v33  ;;  %v576_v36 = vpack.c.bf16 %v552_v32, %v551_v31 }
 0x11d   : > { %v536_v37 = vmul.f32 0.1, %v503_v35  ;;  %999 = vmatmul.msk.bf16.gmra.mxu1 %vm605_vm1, %v576_v36 }
 0x11f   : > { %v568_v39 = vmax.f32 %v503_v35, %v536_v37 }
 0x121   : > { %v584_v40 = vpack.c.bf16 %v568_v39, %v567_v38 }
 0x123   : > { %1007 = vmatmul.msk.bf16.gmra.mxu3 %vm605_vm1, %v584_v40 }
 0x12a   : > { %v663_v42 = vpop.f32.mrf.mxu1 }
 0x12b   : > { %v664_v44 = vadd.f32 %v1435_v43, %v663_v42 }
 0x12d   : > { %1000 = vmatmul.msk.bf16.gmra.mxu1 %vm605_vm1, %v1386_v41 }
 0x132   : > { %v665_v22 = vpop.f32.mrf.mxu1 }
 0x133   : > { %v666_v45 = vadd.f32 %v1435_v43, %v665_v22 }
 0x135   : > { %v1038_v46 = vpack.c.bf16 %v666_v45, %v664_v44 }
 0x137   : > { %1039 = vst [vmem:[%s1441_s10] sm:$0xff] %v1038_v46  }
 0x13a   : > { %v668_v41 = vpop.f32.mrf.mxu1 }
 0x13b   : > { %v669_v48 = vadd.f32 %v1435_v43, %v668_v41 }
 0x142   : > { %v670_v47 = vpop.f32.mrf.mxu1 }
 0x143   : > { %v671_v49 = vadd.f32 %v1435_v43, %v670_v47 }
 0x145   : > { %v1043_v50 = vpack.c.bf16 %v671_v49, %v669_v48 }
 0x146   : > { %v708_v51 = vpop.f32.mrf.mxu3 }
 0x147   : > { %1115 = vst [vmem:[%s1441_s10 + $0x8] sm:$0xff] %v1043_v50   ;;  %v709_v54 = vadd.f32 %v1435_v43, %v708_v51 }
 0x14a   : > { %v673_v52 = vpop.f32.mrf.mxu1 }
 0x14b   : > { %v674_v58 = vadd.f32 %v1435_v43, %v673_v52 }
 0x14e   : > { %v710_v53 = vpop.f32.mrf.mxu3 }
 0x14f   : > { %v711_v55 = vadd.f32 %v1435_v43, %v710_v53 }
 0x151   : > { %v1083_v56 = vpack.c.bf16 %v711_v55, %v709_v54 }
 0x152   : > { %v675_v57 = vpop.f32.mrf.mxu1 }
 0x153   : > { %1123 = vst [vmem:[%s1441_s10 + $0x48] sm:$0xff] %v1083_v56   ;;  %v676_v59 = vadd.f32 %v1435_v43, %v675_v57 }
 0x155   : > { %v1048_v60 = vpack.c.bf16 %v676_v59, %v674_v58 }
 0x156   : > { %v713_v61 = vpop.f32.mrf.mxu3 }
 0x157   : > { %1116 = vst [vmem:[%s1441_s10 + $0x10] sm:$0xff] %v1048_v60   ;;  %v714_v0 = vadd.f32 %v1435_v43, %v713_v61 }
 0x15a   : > { %v678_v62 = vpop.f32.mrf.mxu1 }
 0x15b   : > { %v679_v4 = vadd.f32 %v1435_v43, %v678_v62 }
 0x15e   : > { %v715_v63 = vpop.f32.mrf.mxu3 }
 0x15f   : > { %v716_v1 = vadd.f32 %v1435_v43, %v715_v63 }
 0x161   : > { %v1088_v2 = vpack.c.bf16 %v716_v1, %v714_v0 }
 0x162   : > { %v680_v3 = vpop.f32.mrf.mxu1 }
 0x163   : > { %1124 = vst [vmem:[%s1441_s10 + $0x50] sm:$0xff] %v1088_v2   ;;  %v681_v5 = vadd.f32 %v1435_v43, %v680_v3 }
 0x165   : > { %v1053_v6 = vpack.c.bf16 %v681_v5, %v679_v4 }
 0x166   : > { %v718_v7 = vpop.f32.mrf.mxu3 }
 0x167   : > { %1117 = vst [vmem:[%s1441_s10 + $0x18] sm:$0xff] %v1053_v6   ;;  %v719_v10 = vadd.f32 %v1435_v43, %v718_v7 }
 0x16a   : > { %v683_v8 = vpop.f32.mrf.mxu1 }
 0x16b   : > { %v684_v14 = vadd.f32 %v1435_v43, %v683_v8 }
 0x16e   : > { %v720_v9 = vpop.f32.mrf.mxu3 }
 0x16f   : > { %v721_v11 = vadd.f32 %v1435_v43, %v720_v9 }
 0x171   : > { %v1093_v12 = vpack.c.bf16 %v721_v11, %v719_v10 }
 0x172   : > { %v685_v13 = vpop.f32.mrf.mxu1 }
 0x173   : > { %1125 = vst [vmem:[%s1441_s10 + $0x58] sm:$0xff] %v1093_v12   ;;  %v686_v15 = vadd.f32 %v1435_v43, %v685_v13 }
 0x175   : > { %v1058_v16 = vpack.c.bf16 %v686_v15, %v684_v14 }
 0x176   : > { %v723_v17 = vpop.f32.mrf.mxu3 }
 0x177   : > { %1118 = vst [vmem:[%s1441_s10 + $0x20] sm:$0xff] %v1058_v16   ;;  %v724_v20 = vadd.f32 %v1435_v43, %v723_v17 }
 0x17a   : > { %v688_v18 = vpop.f32.mrf.mxu1 }
 0x17b   : > { %v689_v25 = vadd.f32 %v1435_v43, %v688_v18 }
 0x17e   : > { %v725_v19 = vpop.f32.mrf.mxu3 }
 0x17f   : > { %v726_v21 = vadd.f32 %v1435_v43, %v725_v19 }
 0x181   : > { %v1098_v23 = vpack.c.bf16 %v726_v21, %v724_v20 }
 0x182   : > { %v690_v24 = vpop.f32.mrf.mxu1 }
 0x183   : > { %1126 = vst [vmem:[%s1441_s10 + $0x60] sm:$0xff] %v1098_v23   ;;  %v691_v26 = vadd.f32 %v1435_v43, %v690_v24 }
 0x185   : > { %v1063_v27 = vpack.c.bf16 %v691_v26, %v689_v25 }
 0x186   : > { %v728_v28 = vpop.f32.mrf.mxu3 }
 0x187   : > { %1119 = vst [vmem:[%s1441_s10 + $0x28] sm:$0xff] %v1063_v27   ;;  %v729_v31 = vadd.f32 %v1435_v43, %v728_v28 }
 0x18a   : > { %v693_v29 = vpop.f32.mrf.mxu1 }
 0x18b   : > { %v694_v35 = vadd.f32 %v1435_v43, %v693_v29 }
 0x18e   : > { %v730_v30 = vpop.f32.mrf.mxu3 }
 0x18f   : > { %v731_v32 = vadd.f32 %v1435_v43, %v730_v30 }
 0x191   : > { %v1103_v33 = vpack.c.bf16 %v731_v32, %v729_v31 }
 0x192   : > { %v695_v34 = vpop.f32.mrf.mxu1 }
 0x193   : > { %1127 = vst [vmem:[%s1441_s10 + $0x68] sm:$0xff] %v1103_v33   ;;  %v696_v36 = vadd.f32 %v1435_v43, %v695_v34 }
 0x195   : > { %v1068_v37 = vpack.c.bf16 %v696_v36, %v694_v35 }
 0x196   : > { %v733_v38 = vpop.f32.mrf.mxu3 }
 0x197   : > { %1120 = vst [vmem:[%s1441_s10 + $0x30] sm:$0xff] %v1068_v37   ;;  %v734_v42 = vadd.f32 %v1435_v43, %v733_v38 }
 0x19a   : > { %v698_v39 = vpop.f32.mrf.mxu1 }
 0x19b   : > { %v699_v46 = vadd.f32 %v1435_v43, %v698_v39 }
 0x19e   : > { %v735_v40 = vpop.f32.mrf.mxu3 }
 0x19f   : > { %v736_v22 = vadd.f32 %v1435_v43, %v735_v40 }
 0x1a1   : > { %v1108_v44 = vpack.c.bf16 %v736_v22, %v734_v42 }
 0x1a2   : > { %v700_v45 = vpop.f32.mrf.mxu1 }
 0x1a3   : > { %1128 = vst [vmem:[%s1441_s10 + $0x70] sm:$0xff] %v1108_v44   ;;  %v701_v41 = vadd.f32 %v1435_v43, %v700_v45 }
 0x1a5   : > { %v1073_v47 = vpack.c.bf16 %v701_v41, %v699_v46 }
 0x1a6   : > { %v738_v48 = vpop.f32.mrf.mxu3 }
 0x1a7   : > { %1121 = vst [vmem:[%s1441_s10 + $0x38] sm:$0xff] %v1073_v47   ;;  %v739_v51 = vadd.f32 %v1435_v43, %v738_v48 }
 0x1aa   : > { %v703_v49 = vpop.f32.mrf.mxu1 }
 0x1ab   : > { %v704_v55 = vadd.f32 %v1435_v43, %v703_v49 }
 0x1ae   : > { %v740_v50 = vpop.f32.mrf.mxu3 }
 0x1af   : > { %v741_v52 = vadd.f32 %v1435_v43, %v740_v50 }
 0x1b1   : > { %v1113_v53 = vpack.c.bf16 %v741_v52, %v739_v51 }
 0x1b2   : > { %v705_v54 = vpop.f32.mrf.mxu1 }
 0x1b3   : > { %1129 = vst [vmem:[%s1441_s10 + $0x78] sm:$0xff] %v1113_v53   ;;  %v706_v56 = vadd.f32 %v1435_v43, %v705_v54 }
 0x1b5   : > { %v1078_v57 = vpack.c.bf16 %v706_v56, %v704_v55 }
 0x1b7   : > { %1122 = vst [vmem:[%s1441_s10 + $0x40] sm:$0xff] %v1078_v57  }
 0x1b8   : > { %1205 = shalt.err (!%p1202_p3)
}
 0x1b9   : > { %s1242_s6 = smov 64   ;;  %s1243_s9 = smov 4  }
 0x1ba   : > { %1135 = dma.vmem_to_hbm [thread:$0]  (%p1312_p5), %s821_s15, 2048, %s823_s16, %s808_s22, %s1242_s6, %s1242_s6, %s1243_s9  }
 0x1bb PF: > { %p1141_p4 = scmp.ge.s32.totalorder %s1240_s21, 2  ;;  %s837_s10 = sand.u32 1, %s1228_s18  }
 0x1bc   : > { %s838_s11 = scalar_lea.sflag [#allocation3], %s837_s10 }
 0x1bd   : > { %p1138_p7 = pnand %p1141_p4, %p1316_p6 }
 0x1bf   : > { %p1139_p8 = pneg %p1138_p7 }
 0x1c1   : > { %1223 = dma.done.wait (%p1139_p8), %s838_s11, 2048  }
 0x1c2   : > { %1225 = vsyncadd (%p1139_p8), %s838_s11, 4294965248  ;;  %p15_p9 = scmp.ge.s32.totalorder %s1299_s24, 4   ;;  %s1531_s18 = smov %s1232_s19 }
 0x1c3   : > { %s1532_s19 = smov %s1236_s20  ;;  %s1533_s20 = smov %s1310_s27 }
 0x1c4   : > { %s1534_s21 = smov %s1299_s24  ;;  %17 = sbr.rel (!%p15_p9) target bundleno = 3 (0x3), region = 75 }
 0x1c9   :  { %844 = vsyncpa [#allocation3], 1 }
 0x1ca   :  { %846 = vsyncpa [#allocation3 + $0x1], 1 }

</bundles_post_ra>
